<compile_context>
chip_gen: v5e
topology: v5e:2x2
jax: 0.10.0
libtpu: 0.0.40
codegen_flags: <defaults>
</compile_context>

<pallas_src>
import functools

import jax
import jax.numpy as jnp
from jax.experimental import pallas as pl
from jax.experimental.pallas import tpu as pltpu

EPSILON = 1e-6


def sigmoid_flow_kernel(x_ref, p_ref, xnew_ref, delta_ref, *,
                        n_valid, needs_mask, compute_dtype):
    """One (batch-block, N-tile) grid step.

    x_ref     : (tb, tn)        input (broadcast over H inside the kernel)
    p_ref     : (3, tb, H, tn)  raw params: [0]=a, [1]=b, [2]=w logits
    xnew_ref  : (tb, tn)        lane-dense output in the caller's dtype
    delta_ref : (1, tb, 1)      per-(tile, batch) partial logdet contribution
    """
    cdt = compute_dtype
    f32 = jnp.float32

    pa = p_ref[0].astype(cdt)                                   # (tb, H, tn)
    pb = p_ref[1].astype(cdt)
    pw = p_ref[2].astype(cdt)

    # Mixture parameters; softmax over H (sublane axis), one divide on the
    # reduced (tb, 1, tn) shape.
    a = jax.nn.softplus(pa) + EPSILON                           # (tb, H, tn)
    pw_max = jnp.max(pw, axis=1, keepdims=True)                 # (tb, 1, tn)
    ew = jnp.exp(pw - pw_max)
    denom = jnp.sum(ew.astype(f32), axis=1, keepdims=True)      # (tb, 1, tn)
    w = ew.astype(f32) * (1.0 / denom)                          # (tb, H, tn) f32

    # Sigmoid mixture (single EUP op per element on TPU).
    xc = jnp.clip(x_ref[...].astype(cdt), -100.0, 100.0)        # (tb, tn)
    sigm = jax.nn.sigmoid(a * xc[:, None, :] + pb)              # (tb, H, tn)
    sigm = jnp.clip(sigm.astype(f32), EPSILON, 1.0 - EPSILON)

    ws = w * sigm                                               # f32
    x_pre = jnp.sum(ws, axis=1)                                 # (tb, tn)
    logj = jnp.sum(ws * (1.0 - sigm) * a.astype(f32), axis=1)   # (tb, tn)
    log_logj = jnp.log(jnp.maximum(logj, EPSILON))

    # Logit transform; log(p) / log(1-p) each computed once.
    x_pre_c = jnp.clip(x_pre, EPSILON, 1.0 - EPSILON)
    lp = jnp.log(x_pre_c)
    lq = jnp.log(1.0 - x_pre_c)
    xnew_ref[...] = (lp - lq).astype(xnew_ref.dtype)

    # Per-tile logdet partial: sum_n (log_logj - logdet_logit).
    delta = log_logj - (lp + lq)                                # (tb, tn)
    if needs_mask:  # zero out ragged-boundary N columns (static flag)
        col = (jax.lax.broadcasted_iota(jnp.int32, delta.shape, 1)
               + pl.program_id(1) * delta.shape[1])
        delta = jnp.where(col < n_valid, delta, 0.0)
    delta_ref[...] = jnp.sum(delta, axis=1)[None, :, None]      # (1, tb, 1)


def _vmem_capacity_bytes():
    """Physical VMEM per core; conservative fallback if the query is unavailable."""
    try:
        return int(pltpu.get_tpu_info().vmem_capacity_bytes)
    except Exception:
        return 64 << 20   # v7x per-core value: safe everywhere


def sigmoid_flow(params, x, logdet, hidden_dim, *, tile_n=None,
                 params_transposed=False, bf16_transcendentals=False):
    """Deep-sigmoid-flow layer forward.

    params : (B, N, 3H) packed [a | b | w] (PyTorch layout), or (3, B, H, N)
             when params_transposed=True (producer can skip the relayout pass).
    x      : (B, N),  logdet : (B,).
    Returns (xnew, logdet_out) with xnew in x.dtype.
    """
    B, N = x.shape
    H = hidden_dim

    if params_transposed:
        p3 = params
        assert p3.shape == (3, B, H, N)
    else:
        assert params.shape == (B, N, 3 * H)
        # Single fused relayout pass (no pad, no per-slab split):
        # (B, N, 3, H) -> (3, B, H, N) so N sits on the lane axis in the kernel.
        p3 = jnp.transpose(params.reshape(B, N, 3, H), (2, 0, 3, 1))

    # Batch block: full B when small (block == full dim is always legal),
    # otherwise a sublane-aligned 64-row block (ragged last block is fine).
    tb = B if B <= 64 else 64

    # Gen-gated tile sizing: larger single-copy budget / tile cap on 128 MiB-VMEM
    # chips (v5e/v6e), conservative on v7x (64 MiB per core).
    vmem_cap = _vmem_capacity_bytes()
    big_vmem = vmem_cap >= (96 << 20)
    x_bytes = jnp.dtype(x.dtype).itemsize
    p_bytes = jnp.dtype(p3.dtype).itemsize
    if tile_n is None:
        if N <= 128:
            tile_n = N                      # full dim -> no alignment requirement
        else:
            budget = (28 << 20) if big_vmem else (12 << 20)   # single-copy bytes
            cap = 2048 if big_vmem else 1024
            bytes_per_col = tb * (3 * H * p_bytes + 2 * x_bytes)
            tile_n = max(128, min(cap, (budget // bytes_per_col) // 128 * 128))
            tile_n = min(tile_n, pl.cdiv(N, 128) * 128)
    assert tile_n == N or tile_n % 128 == 0, "tile_n must be lane-aligned or cover N"

    num_bb = pl.cdiv(B, tb)
    num_nt = pl.cdiv(N, tile_n)
    needs_mask = (N % tile_n) != 0

    single_copy = (tb * tile_n * x_bytes            # x
                   + 3 * tb * H * tile_n * p_bytes  # params
                   + tb * tile_n * x_bytes          # xnew
                   + tb * 4)                        # logdet partial
    vmem_limit = int(min((100 << 20) if big_vmem else (48 << 20),
                         max(32 << 20, 2 * single_copy + (8 << 20))))

    kernel = functools.partial(
        sigmoid_flow_kernel,
        n_valid=N, needs_mask=needs_mask,
        compute_dtype=jnp.bfloat16 if bf16_transcendentals else jnp.float32)

    xnew, delta = pl.pallas_call(
        kernel,
        out_shape=(jax.ShapeDtypeStruct((B, N), x.dtype),
                   jax.ShapeDtypeStruct((num_nt, B, 1), jnp.float32)),
        grid_spec=pltpu.PrefetchScalarGridSpec(
            num_scalar_prefetch=0,
            grid=(num_bb, num_nt),
            in_specs=[
                pl.BlockSpec((tb, tile_n), lambda bi, ni: (bi, ni)),              # x
                pl.BlockSpec((3, tb, H, tile_n), lambda bi, ni: (0, bi, 0, ni)),  # a|b|w
            ],
            out_specs=[
                pl.BlockSpec((tb, tile_n), lambda bi, ni: (bi, ni)),          # xnew
                pl.BlockSpec((1, tb, 1), lambda bi, ni: (ni, bi, 0)),         # logdet partials
            ],
        ),
        compiler_params=pltpu.CompilerParams(
            dimension_semantics=("parallel", "parallel"),
            vmem_limit_bytes=vmem_limit),
    )(x, p3)

    # Fold logdet_in + per-tile partials outside the kernel.  The reference's
    # conditional nan_to_num calls collapse into this single one (identical
    # whenever no NaNs occur mid-computation).
    logdet_out = jnp.nan_to_num(
        logdet.astype(jnp.float32) + jnp.sum(delta[:, :, 0], axis=0))
    return xnew, logdet_out


def sigmoid_flow_ref(params, x, logdet, hidden_dim):
    """Pure-JAX reference mirroring the PyTorch forward."""
    H = hidden_dim
    a = jax.nn.softplus(params[..., :H]) + EPSILON
    b = params[..., H:2 * H]
    w = jax.nn.softmax(params[..., 2 * H:], axis=-1)
    xc = jnp.clip(x, -100.0, 100.0)
    pre = a * xc[..., None] + b
    sigm = jnp.clip(jax.nn.sigmoid(pre), EPSILON, 1.0 - EPSILON)
    x_pre = jnp.sum(w * sigm, axis=-1)
    logj = jnp.maximum(jnp.sum(w * sigm * (1.0 - sigm) * a, axis=-1), EPSILON)
    log_logj = jnp.log(logj)
    logdet = logdet + jnp.sum(log_logj.reshape(log_logj.shape[0], -1), axis=1)
    x_pre_c = jnp.clip(x_pre, EPSILON, 1.0 - EPSILON)
    xnew = jnp.log(x_pre_c) - jnp.log(1.0 - x_pre_c)
    logdet_logit = jnp.log(x_pre_c) + jnp.log(1.0 - x_pre_c)
    logdet = logdet - jnp.sum(logdet_logit.reshape(logdet_logit.shape[0], -1), axis=1)
    return xnew, logdet


if __name__ == "__main__":
    key = jax.random.PRNGKey(0)
    k_small, k_big = jax.random.split(key)

    # --- small smoke test (single tile, tile_n == N), natural param layout ---
    B, N, H = 2, 16, 32
    kp, kx, kl = jax.random.split(k_small, 3)
    params = jax.random.normal(kp, (B, N, 3 * H), dtype=jnp.float32)
    x = jax.random.normal(kx, (B, N), dtype=jnp.float32) * 2.0
    logdet = jax.random.normal(kl, (B,), dtype=jnp.float32)

    xnew, ld = sigmoid_flow(params, x, logdet, hidden_dim=H)
    jax.block_until_ready((xnew, ld))
    xnew_r, ld_r = sigmoid_flow_ref(params, x, logdet, H)
    assert xnew.dtype == x.dtype
    assert jnp.allclose(xnew, xnew_r, rtol=2e-5, atol=2e-5)
    assert jnp.allclose(ld, ld_r, rtol=1e-4, atol=1e-4)

    # --- pre-transposed producer path (skips the wrapper relayout entirely) ---
    p3 = jnp.transpose(params.reshape(B, N, 3, H), (2, 0, 3, 1))
    xnew_t, ld_t = sigmoid_flow(p3, x, logdet, hidden_dim=H, params_transposed=True)
    jax.block_until_ready((xnew_t, ld_t))
    assert jnp.allclose(xnew_t, xnew_r, rtol=2e-5, atol=2e-5)
    assert jnp.allclose(ld_t, ld_r, rtol=1e-4, atol=1e-4)

    # --- multi-tile test: ragged N (no pad), both grid axes parallel ---
    B2, N2, H2 = 16, 300, 16
    kp2, kx2, kl2 = jax.random.split(k_big, 3)
    params2 = jax.random.normal(kp2, (B2, N2, 3 * H2), dtype=jnp.float32)
    x2 = jax.random.normal(kx2, (B2, N2), dtype=jnp.float32) * 2.0
    logdet2 = jax.random.normal(kl2, (B2,), dtype=jnp.float32)

    xnew2, ld2 = sigmoid_flow(params2, x2, logdet2, hidden_dim=H2, tile_n=128)
    jax.block_until_ready((xnew2, ld2))
    xnew2_r, ld2_r = sigmoid_flow_ref(params2, x2, logdet2, H2)
    assert jnp.allclose(xnew2, xnew2_r, rtol=2e-5, atol=2e-5)
    assert jnp.allclose(ld2, ld2_r, rtol=1e-4, atol=1e-3)

    print("KERNEL_OK")
</pallas_src>

<mosaic_0001>
module attributes {stable_mosaic.version = 11 : i64} {
  func.func @sigmoid_flow_kernel(%arg0: i32, %arg1: i32, %arg2: memref<2x16xf32, #tpu.memory_space<vmem>>, %arg3: memref<3x2x32x16xf32, #tpu.memory_space<vmem>>, %arg4: memref<2x16xf32, #tpu.memory_space<vmem>>, %arg5: memref<1x2x1xf32, #tpu.memory_space<vmem>>) attributes {dimension_semantics = [#tpu.dimension_semantics<parallel>, #tpu.dimension_semantics<parallel>], iteration_bounds = array<i64: 1, 1>, scalar_prefetch = 0 : i64, scratch_operands = 0 : i64, tpu.core_type = #tpu.core_type<tc>, window_params = [{transform_indices = @transform_0, window_bounds = array<i64: 2, 16>}, {transform_indices = @transform_1, window_bounds = array<i64: 3, 2, 32, 16>}, {transform_indices = @transform_2, window_bounds = array<i64: 2, 16>}, {transform_indices = @transform_3, window_bounds = array<i64: 1, 2, 1>}]} {
    %c0 = arith.constant 0 : index
    %c0_0 = arith.constant 0 : index
    %c0_1 = arith.constant 0 : index
    %c0_2 = arith.constant 0 : index
    %0 = vector.load %arg3[%c0, %c0_0, %c0_1, %c0_2] : memref<3x2x32x16xf32, #tpu.memory_space<vmem>>, vector<1x2x32x16xf32>
    %1 = vector.shape_cast %0 : vector<1x2x32x16xf32> to vector<2x32x16xf32>
    %c1 = arith.constant 1 : index
    %c0_3 = arith.constant 0 : index
    %c0_4 = arith.constant 0 : index
    %c0_5 = arith.constant 0 : index
    %2 = vector.load %arg3[%c1, %c0_3, %c0_4, %c0_5] : memref<3x2x32x16xf32, #tpu.memory_space<vmem>>, vector<1x2x32x16xf32>
    %3 = vector.shape_cast %2 : vector<1x2x32x16xf32> to vector<2x32x16xf32>
    %c2 = arith.constant 2 : index
    %c0_6 = arith.constant 0 : index
    %c0_7 = arith.constant 0 : index
    %c0_8 = arith.constant 0 : index
    %4 = vector.load %arg3[%c2, %c0_6, %c0_7, %c0_8] : memref<3x2x32x16xf32, #tpu.memory_space<vmem>>, vector<1x2x32x16xf32>
    %5 = vector.shape_cast %4 : vector<1x2x32x16xf32> to vector<2x32x16xf32>
    %cst = arith.constant 0.000000e+00 : f32
    %6 = vector.broadcast %cst : f32 to vector<2x32x16xf32>
    %7 = arith.maximumf %1, %6 : vector<2x32x16xf32>
    %8 = vector.broadcast %cst : f32 to vector<2x32x16xf32>
    %9 = arith.subf %1, %8 : vector<2x32x16xf32>
    %10 = arith.cmpf one, %9, %9 : vector<2x32x16xf32>
    %11 = vector.broadcast %cst : f32 to vector<2x32x16xf32>
    %12 = arith.addf %1, %11 : vector<2x32x16xf32>
    %13 = math.absf %9 : vector<2x32x16xf32>
    %cst_9 = arith.constant 0.000000e+00 : f32
    %14 = vector.broadcast %cst_9 : f32 to vector<2x32x16xf32>
    %15 = arith.subf %14, %13 : vector<2x32x16xf32>
    %16 = math.exp %15 : vector<2x32x16xf32>
    %17 = math.log1p %16 : vector<2x32x16xf32>
    %18 = arith.addf %7, %17 : vector<2x32x16xf32>
    %19 = arith.select %10, %12, %18 : vector<2x32x16xi1>, vector<2x32x16xf32>
    %cst_10 = arith.constant 9.99999997E-7 : f32
    %20 = vector.broadcast %cst_10 : f32 to vector<2x32x16xf32>
    %21 = arith.addf %19, %20 : vector<2x32x16xf32>
    %cst_11 = arith.constant dense<0xFF800000> : vector<2x16xf32>
    %22 = vector.multi_reduction <maximumf>, %5, %cst_11 [1] : vector<2x32x16xf32> to vector<2x16xf32>
    %23 = vector.shape_cast %22 : vector<2x16xf32> to vector<2x1x16xf32>
    %24 = vector.broadcast %23 : vector<2x1x16xf32> to vector<2x32x16xf32>
    %25 = arith.subf %5, %24 : vector<2x32x16xf32>
    %26 = math.exp %25 : vector<2x32x16xf32>
    %cst_12 = arith.constant dense<0.000000e+00> : vector<2x16xf32>
    %27 = vector.multi_reduction <add>, %26, %cst_12 [1] : vector<2x32x16xf32> to vector<2x16xf32>
    %28 = vector.shape_cast %27 : vector<2x16xf32> to vector<2x1x16xf32>
    %cst_13 = arith.constant 1.000000e+00 : f32
    %29 = vector.broadcast %cst_13 : f32 to vector<2x1x16xf32>
    %30 = arith.divf %29, %28 : vector<2x1x16xf32>
    %31 = vector.broadcast %30 : vector<2x1x16xf32> to vector<2x32x16xf32>
    %32 = arith.mulf %26, %31 : vector<2x32x16xf32>
    %c0_14 = arith.constant 0 : index
    %c0_15 = arith.constant 0 : index
    %33 = vector.load %arg2[%c0_14, %c0_15] : memref<2x16xf32, #tpu.memory_space<vmem>>, vector<2x16xf32>
    %cst_16 = arith.constant -1.000000e+02 : f32
    %cst_17 = arith.constant 1.000000e+02 : f32
    %34 = vector.broadcast %cst_16 : f32 to vector<2x16xf32>
    %35 = arith.maximumf %34, %33 : vector<2x16xf32>
    %36 = vector.broadcast %cst_17 : f32 to vector<2x16xf32>
    %37 = arith.minimumf %36, %35 : vector<2x16xf32>
    %38 = vector.shape_cast %37 : vector<2x16xf32> to vector<2x1x16xf32>
    %39 = vector.broadcast %38 : vector<2x1x16xf32> to vector<2x32x16xf32>
    %40 = arith.mulf %21, %39 : vector<2x32x16xf32>
    %41 = arith.addf %40, %3 : vector<2x32x16xf32>
    %42 = arith.negf %41 : vector<2x32x16xf32>
    %43 = math.exp %42 : vector<2x32x16xf32>
    %cst_18 = arith.constant 1.000000e+00 : f32
    %44 = vector.broadcast %cst_18 : f32 to vector<2x32x16xf32>
    %45 = arith.addf %44, %43 : vector<2x32x16xf32>
    %46 = arith.divf %44, %45 : vector<2x32x16xf32>
    %cst_19 = arith.constant 9.99999997E-7 : f32
    %cst_20 = arith.constant 0.999998986 : f32
    %47 = vector.broadcast %cst_19 : f32 to vector<2x32x16xf32>
    %48 = arith.maximumf %47, %46 : vector<2x32x16xf32>
    %49 = vector.broadcast %cst_20 : f32 to vector<2x32x16xf32>
    %50 = arith.minimumf %49, %48 : vector<2x32x16xf32>
    %51 = arith.mulf %32, %50 : vector<2x32x16xf32>
    %cst_21 = arith.constant dense<0.000000e+00> : vector<2x16xf32>
    %52 = vector.multi_reduction <add>, %51, %cst_21 [1] : vector<2x32x16xf32> to vector<2x16xf32>
    %cst_22 = arith.constant 1.000000e+00 : f32
    %53 = vector.broadcast %cst_22 : f32 to vector<2x32x16xf32>
    %54 = arith.subf %53, %50 : vector<2x32x16xf32>
    %55 = arith.mulf %51, %54 : vector<2x32x16xf32>
    %56 = arith.mulf %55, %21 : vector<2x32x16xf32>
    %cst_23 = arith.constant dense<0.000000e+00> : vector<2x16xf32>
    %57 = vector.multi_reduction <add>, %56, %cst_23 [1] : vector<2x32x16xf32> to vector<2x16xf32>
    %cst_24 = arith.constant 9.99999997E-7 : f32
    %58 = vector.broadcast %cst_24 : f32 to vector<2x16xf32>
    %59 = arith.maximumf %57, %58 : vector<2x16xf32>
    %60 = math.log %59 : vector<2x16xf32>
    %cst_25 = arith.constant 9.99999997E-7 : f32
    %cst_26 = arith.constant 0.999998986 : f32
    %61 = vector.broadcast %cst_25 : f32 to vector<2x16xf32>
    %62 = arith.maximumf %61, %52 : vector<2x16xf32>
    %63 = vector.broadcast %cst_26 : f32 to vector<2x16xf32>
    %64 = arith.minimumf %63, %62 : vector<2x16xf32>
    %65 = math.log %64 : vector<2x16xf32>
    %cst_27 = arith.constant 1.000000e+00 : f32
    %66 = vector.broadcast %cst_27 : f32 to vector<2x16xf32>
    %67 = arith.subf %66, %64 : vector<2x16xf32>
    %68 = math.log %67 : vector<2x16xf32>
    %69 = arith.subf %65, %68 : vector<2x16xf32>
    %c0_28 = arith.constant 0 : index
    %c0_29 = arith.constant 0 : index
    %70 = vector.load %arg4[%c0_28, %c0_29] : memref<2x16xf32, #tpu.memory_space<vmem>>, vector<2x16xf32>
    tpu.vector_store %arg4[%c0_28, %c0_29], %69 {strides = array<i32>} : memref<2x16xf32, #tpu.memory_space<vmem>>, vector<2x16xf32>,
    %71 = arith.addf %65, %68 : vector<2x16xf32>
    %72 = arith.subf %60, %71 : vector<2x16xf32>
    %cst_30 = arith.constant dense<0.000000e+00> : vector<2xf32>
    %73 = vector.multi_reduction <add>, %72, %cst_30 [1] : vector<2x16xf32> to vector<2xf32>
    %74 = vector.shape_cast %73 : vector<2xf32> to vector<1x2x1xf32>
    %c0_31 = arith.constant 0 : index
    %c0_32 = arith.constant 0 : index
    %c0_33 = arith.constant 0 : index
    %75 = vector.load %arg5[%c0_31, %c0_32, %c0_33] : memref<1x2x1xf32, #tpu.memory_space<vmem>>, vector<1x2x1xf32>
    tpu.vector_store %arg5[%c0_31, %c0_32, %c0_33], %74 {strides = array<i32>} : memref<1x2x1xf32, #tpu.memory_space<vmem>>, vector<1x2x1xf32>,
    return
  }
  func.func @transform_0(%arg0: i32, %arg1: i32) -> (i32, i32) {
    %c0_i32 = arith.constant 0 : i32
    return %arg0, %arg1 : i32, i32
  }
  func.func @transform_1(%arg0: i32, %arg1: i32) -> (i32, i32, i32, i32) {
    %c0_i32 = arith.constant 0 : i32
    %c0_i32_0 = arith.constant 0 : i32
    %c0_i32_1 = arith.constant 0 : i32
    return %c0_i32, %arg0, %c0_i32_0, %arg1 : i32, i32, i32, i32
  }
  func.func @transform_2(%arg0: i32, %arg1: i32) -> (i32, i32) {
    %c0_i32 = arith.constant 0 : i32
    return %arg0, %arg1 : i32, i32
  }
  func.func @transform_3(%arg0: i32, %arg1: i32) -> (i32, i32, i32) {
    %c0_i32 = arith.constant 0 : i32
    %c0_i32_0 = arith.constant 0 : i32
    return %arg1, %arg0, %c0_i32 : i32, i32, i32
  }
}

</mosaic_0001>

<bundles_post_ra>
// kernel: tpu_custom_call.1
= control target key start
LH: loop header
LB: loop body
LE: loop exit
PB: predicated region body
PF: predicated region fallthrough
CT: control target
= control target key end

     0   :  { %9 = vsyncpa [#allocation3], 0  ;;  %vm192_vm0 = vcmask 130048   ;;  %s1456_s0 = inlined_call_operand.vmem [shape: f32[2,16], index: 0, kind: input, shape index: {}]   ;;  %s1457_s1 = inlined_call_operand.vmem [shape: f32[3,2,32,16], index: 1, kind: input, shape index: {}]   ;;  %s1458_s2 = inlined_call_operand.hbm [shape: f32[2,16], index: 2, kind: output, shape index: {0}]   ;;  %s1459_s3 = inlined_call_operand.vmem [shape: f32[1,2,1], index: 3, kind: output, shape index: {1}]  }
   0x1   :  { %v818_v0 = vld [vmem:[%s1457_s1] sm:$0xff]  ;;  %v823_v1 = vld [vmem:[%s1457_s1 + $0x8] sm:$0xff]  ;;  %v828_v2 = vld [vmem:[%s1457_s1 + $0x10] sm:$0xff]  ;;  %s633_s10 = sshll.u32 %s1458_s2, 4  ;;  %s634_s10 = int_to_ptr.hbm [resolvable:$true] %s633_s10 }
   0x2   :  { %v833_v3 = vld [vmem:[%s1457_s1 + $0x18] sm:$0xff]  ;;  %v838_v4 = vld [vmem:[%s1457_s1 + $0x20] sm:$0xff]  ;;  %v64_v5 = vand.u32 2147483647, %v818_v0  ;;  %v844_v6 = vld [vmem:[%s1457_s1 + $0x28] sm:$0xff]  ;;  %v40_v40 = vmax.f32 %v818_v0, 0.0  ;;  %vm48_vm4 = vcmp.ne.f32.partialorder %v818_v0, %v818_v0  ;;  %vm49_vm6 = vcmp.ne.f32.partialorder %v823_v1, %v823_v1 }
   0x3   :  { %v849_v7 = vld [vmem:[%s1457_s1 + $0x30] sm:$0xff]  ;;  %v854_v8 = vld [vmem:[%s1457_s1 + $0x38] sm:$0xff]  ;;  %v65_v9 = vand.u32 2147483647, %v823_v1  ;;  %v66_v10 = vand.u32 2147483647, %v828_v2  ;;  %vm50_vm7 = vcmp.ne.f32.partialorder %v828_v2, %v828_v2  ;;  %vm51_vm8 = vcmp.ne.f32.partialorder %v833_v3, %v833_v3 }
   0x4   :  { %v72_v11 = vsub.f32 0.0, %v64_v5  ;;  %v67_v12 = vand.u32 2147483647, %v833_v3  ;;  %v68_v13 = vand.u32 2147483647, %v838_v4  ;;  %v863_v15 = vld [vmem:[%s1457_s1 + $0x80] sm:$0xff]  ;;  %vm52_vm10 = vcmp.ne.f32.partialorder %v838_v4, %v838_v4 }
   0x5   :  { %v73_v14 = vsub.f32 0.0, %v65_v9  ;;  %v69_v16 = vand.u32 2147483647, %v844_v6  ;;  %v70_v17 = vand.u32 2147483647, %v849_v7  ;;  %v871_v19 = vld [vmem:[%s1457_s1 + $0x88] sm:$0xff]  ;;  %vm53_vm11 = vcmp.ne.f32.partialorder %v844_v6, %v844_v6 }
   0x6   :  { %v71_v18 = vand.u32 2147483647, %v854_v8  ;;  %v876_v20 = vld [vmem:[%s1457_s1 + $0x90] sm:$0xff]  ;;  %v74_v21 = vsub.f32 0.0, %v66_v10  ;;  %v75_v22 = vsub.f32 0.0, %v67_v12  ;;  %v76_v23 = vsub.f32 0.0, %v68_v13 }
   0x7   :  { %v80_v24 = vmul.f32 1.442695, %v72_v11  ;;  %v881_v25 = vld [vmem:[%s1457_s1 + $0x98] sm:$0xff]  ;;  %v77_v26 = vsub.f32 0.0, %v69_v16  ;;  %v78_v27 = vsub.f32 0.0, %v70_v17  ;;  %v193_v35 = vsel %vm192_vm0, %v863_v15, -inf }
   0x8   :  { %v79_v28 = vsub.f32 0.0, %v71_v18  ;;  %v82_v29 = vmul.f32 1.442695, %v73_v14  ;;  %v84_v30 = vmul.f32 1.442695, %v74_v21  ;;  %v194_v36 = vsel %vm192_vm0, %v871_v19, -inf }
   0x9   :  { %672 = vpow2.f32 %v80_v24  ;;  %v86_v31 = vmul.f32 1.442695, %v75_v22  ;;  %v88_v32 = vmul.f32 1.442695, %v76_v23  ;;  %v90_v33 = vmul.f32 1.442695, %v77_v26 }
   0xa   :  { %674 = vpow2.f32 %v82_v29  ;;  %v92_v34 = vmul.f32 1.442695, %v78_v27  ;;  %v195_v37 = vsel %vm192_vm0, %v876_v20, -inf  ;;  %v197_v38 = vsel %vm192_vm0, %v881_v25, -inf  ;;  %v894_v39 = vld [vmem:[%s1457_s1 + $0xa0] sm:$0xff]  ;;  %v905_v48 = vld [vmem:[%s1457_s1 + $0xa8] sm:$0xff] }
   0xb   :  { %676 = vpow2.f32 %v84_v30  ;;  %v41_v41 = vmax.f32 %v823_v1, 0.0  ;;  %v94_v42 = vmul.f32 1.442695, %v79_v28  ;;  %v42_v43 = vmax.f32 %v828_v2, 0.0  ;;  %v910_v49 = vld [vmem:[%s1457_s1 + $0xb0] sm:$0xff]  ;;  %v916_v54 = vld [vmem:[%s1457_s1 + $0xb8] sm:$0xff] }
   0xc   :  { %678 = vpow2.f32 %v86_v31  ;;  %v43_v44 = vmax.f32 %v833_v3, 0.0  ;;  %v44_v45 = vmax.f32 %v838_v4, 0.0  ;;  %v45_v46 = vmax.f32 %v844_v6, 0.0 }
   0xd   :  { %680 = vpow2.f32 %v88_v32  ;;  %v46_v50 = vmax.f32 %v849_v7, 0.0  ;;  %v196_v51 = vmax.f32 %v193_v35, %v195_v37  ;;  %v198_v52 = vmax.f32 %v194_v36, %v197_v38 }
   0xe   :  { %682 = vpow2.f32 %v90_v33  ;;  %v47_v55 = vmax.f32 %v854_v8, 0.0  ;;  %v921_v57 = vsel %vm192_vm0, %v894_v39, -inf  ;;  %v925_v5 = vsel %vm192_vm0, %v905_v48, -inf }
   0xf   :  { %v673_v47 = vpop.eup %672  ;;  %684 = vpow2.f32 %v92_v34  ;;  %v929_v9 = vsel %vm192_vm0, %v910_v49, -inf  ;;  %v931_v12 = vmax.f32 %v196_v51, %v198_v52  ;;  %v935_v13 = vsel %vm192_vm0, %v916_v54, -inf }
  0x10   :  { %v675_v53 = vpop.eup %674  ;;  %v96_v56 = vadd.f32 1.0, %v673_v47  ;;  %686 = vpow2.f32 %v94_v42  ;;  %v99_v59 = vmul.f32 -0.5, %v673_v47  ;;  %v102_v14 = vand.u32 2147483647, %v673_v47 }
  0x11   :  { %v677_v58 = vpop.eup %676  ;;  %v105_v60 = vadd.f32 1.0, %v675_v53  ;;  %v108_v61 = vmul.f32 -0.5, %v675_v53  ;;  %v111_v16 = vand.u32 2147483647, %v675_v53  ;;  %v200_v33 = vrot.slane %v931_v12, 4 }
  0x12   :  { %v679_v62 = vpop.eup %678  ;;  %688 = vlog2.f32 %v96_v56  ;;  %v114_v63 = vadd.f32 1.0, %v677_v58  ;;  %v117_v11 = vmul.f32 -0.5, %v677_v58  ;;  %v100_v21 = vadd.f32 1.0, %v99_v59 }
  0x13   :  { %v681_v10 = vpop.eup %680  ;;  %690 = vlog2.f32 %v105_v60  ;;  %v123_v17 = vadd.f32 1.0, %v679_v62  ;;  %v109_v22 = vadd.f32 1.0, %v108_v61  ;;  %v120_v23 = vand.u32 2147483647, %v677_v58 }
  0x14   :  { %692 = vlog2.f32 %v114_v63  ;;  %v937_v18 = vpop.eup %682  ;;  %v126_v24 = vmul.f32 -0.5, %v679_v62  ;;  %v118_v27 = vadd.f32 1.0, %v117_v11  ;;  %v132_v28 = vadd.f32 1.0, %v681_v10 }
  0x15   :  { %v939_v26 = vpop.eup %684  ;;  %694 = vlog2.f32 %v123_v17  ;;  %v135_v29 = vmul.f32 -0.5, %v681_v10  ;;  %v129_v32 = vand.u32 2147483647, %v679_v62  ;;  %v209_v34 = vmax.f32 %v921_v57, %v929_v9 }
  0x16   :  { %v941_v30 = vpop.eup %686  ;;  %v127_v31 = vadd.f32 1.0, %v126_v24  ;;  %vm946_vm1 = vcmp.lt.f32.partialorder %v102_v14, 0.0004427343  ;;  %696 = vlog2.f32 %v132_v28  ;;  %v141_v37 = vadd.f32 1.0, %v937_v18 }
  0x17   :  { %v144_v38 = vmul.f32 -0.5, %v937_v18  ;;  %v101_v51 = vmul.f32 %v673_v47, %v100_v21  ;;  %v110_v52 = vmul.f32 %v675_v53, %v109_v22  ;;  %vm952_vm2 = vcmp.lt.f32.partialorder %v111_v16, 0.0004427343 }
  0x18   :  { %v689_v35 = vpop.eup %688  ;;  %vm956_vm3 = vcmp.lt.f32.partialorder %v120_v23, 0.0004427343  ;;  %v119_v61 = vmul.f32 %v677_v58, %v118_v27  ;;  %v136_v63 = vadd.f32 1.0, %v135_v29  ;;  %v138_v11 = vand.u32 2147483647, %v681_v10 }
  0x19   :  { %v691_v42 = vpop.eup %690  ;;  %698 = vlog2.f32 %v141_v37  ;;  %v98_v14 = vmul.f32 0.6931472, %v689_v35  ;;  %v128_v17 = vmul.f32 %v679_v62, %v127_v31  ;;  %vm962_vm5 = vcmp.lt.f32.partialorder %v129_v32, 0.0004427343 }
  0x1a   :  { %v693_v60 = vpop.eup %692  ;;  %v150_v53 = vadd.f32 1.0, %v939_v26  ;;  %v107_v21 = vmul.f32 0.6931472, %v691_v42  ;;  %v145_v22 = vadd.f32 1.0, %v144_v38  ;;  %v153_v23 = vmul.f32 -0.5, %v939_v26 }
  0x1b   :  { %v695_v16 = vpop.eup %694  ;;  %v116_v58 = vmul.f32 0.6931472, %v693_v60  ;;  %v147_v24 = vand.u32 2147483647, %v937_v18  ;;  %v159_v27 = vadd.f32 1.0, %v941_v30  ;;  %v137_v29 = vmul.f32 %v681_v10, %v136_v63 }
  0x1c   :  { %v125_v62 = vmul.f32 0.6931472, %v695_v16  ;;  %700 = vlog2.f32 %v150_v53  ;;  %v697_v28 = vpop.eup %696  ;;  %vm976_vm9 = vcmp.lt.f32.partialorder %v138_v11, 0.0004427343  ;;  %v154_v32 = vadd.f32 1.0, %v153_v23 }
  0x1d   :  { %v162_v35 = vmul.f32 -0.5, %v941_v30  ;;  %v104_v37 = vsel %vm946_vm1, %v101_v51, %v98_v14  ;;  %v134_v38 = vmul.f32 0.6931472, %v697_v28  ;;  %v156_v42 = vand.u32 2147483647, %v939_v26 }
  0x1e   :  { %702 = vlog2.f32 %v159_v27  ;;  %v113_v10 = vsel %vm952_vm2, %v110_v52, %v107_v21  ;;  %v122_v63 = vsel %vm956_vm3, %v119_v61, %v116_v58  ;;  %v146_v11 = vmul.f32 %v937_v18, %v145_v22  ;;  %v307_v58 = vld [vmem:[%s1456_s0] sm:$0x3] }
  0x1f   :  { %v699_v60 = vpop.eup %698  ;;  %v163_v53 = vadd.f32 1.0, %v162_v35  ;;  %v131_v36 = vsel %vm962_vm5, %v128_v17, %v125_v62  ;;  %vm995_vm12 = vcmp.lt.f32.partialorder %v147_v24, 0.0004427343  ;;  %v165_v16 = vand.u32 2147483647, %v941_v30 }
  0x20   :  { %v143_v51 = vmul.f32 0.6931472, %v699_v60  ;;  %v140_v56 = vsel %vm976_vm9, %v137_v29, %v134_v38  ;;  %v155_v52 = vmul.f32 %v939_v26, %v154_v32  ;;  %v168_v59 = vadd.f32 %v104_v37, %v40_v40 }
  0x21   :  { %v211_v18 = vmax.f32 %v925_v5, %v935_v13  ;;  %vm54_vm13 = vcmp.ne.f32.partialorder %v849_v7, %v849_v7  ;;  %vm1009_vm14 = vcmp.lt.f32.partialorder %v156_v42, 0.0004427343  ;;  %v169_v47 = vadd.f32 %v113_v10, %v41_v41 }
  0x22   :  { %v701_v61 = vpop.eup %700  ;;  %v170_v26 = vadd.f32 %v122_v63, %v42_v43  ;;  %v149_v40 = vsel %vm995_vm12, %v146_v11, %v143_v51  ;;  %v164_v5 = vmul.f32 %v941_v30, %v163_v53  ;;  %v171_v13 = vadd.f32 %v131_v36, %v43_v44 }
  0x23   :  { %v152_v21 = vmul.f32 0.6931472, %v701_v61  ;;  %vm55_vm15 = vcmp.ne.f32.partialorder %v854_v8, %v854_v8  ;;  %vm1027_vm1 = vcmp.lt.f32.partialorder %v165_v16, 0.0004427343  ;;  %v172_v43 = vadd.f32 %v140_v56, %v44_v45 }
  0x24   :  { %v703_v22 = vpop.eup %702  ;;  %v201_v30 = vmax.f32 %v931_v12, %v200_v33  ;;  %v176_v62 = vsel %vm48_vm4, %v818_v0, %v168_v59  ;;  %v212_v24 = vmax.f32 %v209_v34, %v211_v18  ;;  %v173_v45 = vadd.f32 %v149_v40, %v45_v46 }
  0x25   :  { %v158_v44 = vsel %vm1009_vm14, %v155_v52, %v152_v21  ;;  %v161_v23 = vmul.f32 0.6931472, %v703_v22  ;;  %v177_v12 = vsel %vm49_vm6, %v823_v1, %v169_v47  ;;  %v662_v27 = vclamps-f32 %v307_v58, 100.0  ;;  %v649_v58 = vld [vmem:[%s1457_s1 + $0x58] sm:$0xff] }
  0x26   :  { %v202_v33 = vrot.slane %v201_v30, 2  ;;  %v178_v0 = vsel %vm50_vm7, %v828_v2, %v170_v26  ;;  %v179_v46 = vsel %vm51_vm8, %v833_v3, %v171_v13  ;;  %v213_v57 = vrot.slane %v212_v24, 4 }
  0x27   :  { %v167_v28 = vsel %vm1027_vm1, %v164_v5, %v161_v23  ;;  %v174_v9 = vadd.f32 %v158_v44, %v46_v50  ;;  %v1065_v34 = vadd.f32 1e-06, %v176_v62  ;;  %v180_v2 = vsel %vm52_vm10, %v838_v4, %v172_v43  ;;  %v650_v44 = vld [vmem:[%s1457_s1 + $0x60] sm:$0xff]  ;;  %v651_v23 = vld [vmem:[%s1457_s1 + $0x68] sm:$0xff] }
  0x28   :  { %v175_v1 = vadd.f32 %v167_v28, %v47_v55  ;;  %v203_v29 = vmax.f32 %v201_v30, %v202_v33  ;;  %v214_v31 = vmax.f32 %v212_v24, %v213_v57  ;;  %v311_v32 = vrot.slane %v662_v27, 1  ;;  %v653_v28 = vld [vmem:[%s1457_s1 + $0x78] sm:$0xff] }
  0x29   :  { %v312_v35 = vperm.slane %v662_v27, 0  ;;  %v181_v3 = vsel %vm53_vm11, %v844_v6, %v173_v45  ;;  %v1075_v50 = vadd.f32 1e-06, %v177_v12  ;;  %v1077_v55 = vadd.f32 1e-06, %v178_v0 }
  0x2a   :  { %v204_v37 = vrot.slane %v203_v29, 1  ;;  %v1079_v38 = vadd.f32 1e-06, %v179_v46  ;;  %v215_v42 = vrot.slane %v214_v31, 2  ;;  %v182_v4 = vsel %vm54_vm13, %v849_v7, %v174_v9 }
  0x2b   :  { %v183_v60 = vsel %vm55_vm15, %v854_v8, %v175_v1  ;;  %v1089_v10 = vadd.f32 1e-06, %v180_v2  ;;  %v1091_v63 = vadd.f32 1e-06, %v181_v3  ;;  %v313_v53 = vperm.slane %v311_v32, 0  ;;  %v646_v8 = vld [vmem:[%s1457_s1 + $0x40] sm:$0xff] }
  0x2c   :  { %v205_v6 = vmax.f32 %v203_v29, %v204_v37  ;;  %v216_v11 = vmax.f32 %v214_v31, %v215_v42  ;;  %v316_v36 = vmul.f32 %v312_v35, %v1065_v34  ;;  %v1101_v56 = vadd.f32 1e-06, %v182_v4 }
  0x2d   :  { %v1103_v52 = vadd.f32 1e-06, %v183_v60  ;;  %v317_v17 = vmul.f32 %v312_v35, %v1075_v50  ;;  %v319_v26 = vmul.f32 %v312_v35, %v1079_v38  ;;  %v320_v40 = vmul.f32 %v313_v53, %v1089_v10 }
  0x2e   :  { %v219_v51 = vsub.f32 %v863_v15, %v205_v6  ;;  %v220_v14 = vsub.f32 %v871_v19, %v205_v6  ;;  %v221_v7 = vsub.f32 %v876_v20, %v205_v6  ;;  %v222_v16 = vsub.f32 %v881_v25, %v205_v6  ;;  %v647_v19 = vld [vmem:[%s1457_s1 + $0x48] sm:$0xff]  ;;  %v648_v20 = vld [vmem:[%s1457_s1 + $0x50] sm:$0xff] }
  0x2f   :  { %v217_v59 = vrot.slane %v216_v11, 1  ;;  %v318_v15 = vmul.f32 %v312_v35, %v1077_v55  ;;  %v321_v5 = vmul.f32 %v313_v53, %v1091_v63  ;;  %v324_v13 = vadd.f32 %v646_v8, %v316_v36 }
  0x30   :  { %v227_v18 = vmul.f32 1.442695, %v219_v51  ;;  %v229_v61 = vmul.f32 1.442695, %v220_v14  ;;  %v231_v47 = vmul.f32 1.442695, %v221_v7  ;;  %v322_v62 = vmul.f32 %v313_v53, %v1101_v56 }
  0x31   :  { %v218_v25 = vmax.f32 %v216_v11, %v217_v59  ;;  %v233_v21 = vmul.f32 1.442695, %v222_v16  ;;  %v325_v24 = vadd.f32 %v647_v19, %v317_v17  ;;  %v326_v45 = vadd.f32 %v648_v20, %v318_v15 }
  0x32   :  { %704 = vpow2.f32 %v227_v18  ;;  %v323_v33 = vmul.f32 %v313_v53, %v1103_v52  ;;  %v327_v27 = vadd.f32 %v649_v58, %v319_v26  ;;  %v328_v0 = vadd.f32 %v650_v44, %v320_v40 }
  0x33   :  { %v223_v22 = vsub.f32 %v894_v39, %v218_v25  ;;  %v224_v41 = vsub.f32 %v905_v48, %v218_v25  ;;  %v225_v43 = vsub.f32 %v910_v49, %v218_v25  ;;  %v226_v30 = vsub.f32 %v916_v54, %v218_v25  ;;  %v652_v49 = vld [vmem:[%s1457_s1 + $0x70] sm:$0xff]  ;;  %s794_s1 = smov [#allocation2]  }
  0x34   :  { %706 = vpow2.f32 %v229_v61  ;;  %v663_v46 = vmul.f32 -1.442695, %v324_v13  ;;  %v329_v9 = vadd.f32 %v651_v23, %v321_v5  ;;  %v664_v1 = vmul.f32 -1.442695, %v325_v24  ;;  %s631_s7 = sshll.u32 %s794_s1, 4  ;;  %s632_s7 = int_to_ptr.vmem [resolvable:$true] %s631_s7 }
  0x35   :  { %708 = vpow2.f32 %v231_v47  ;;  %v235_v39 = vmul.f32 1.442695, %v223_v22  ;;  %v237_v48 = vmul.f32 1.442695, %v224_v41  ;;  %v239_v12 = vmul.f32 1.442695, %v225_v43 }
  0x36   :  { %710 = vpow2.f32 %v233_v21  ;;  %v241_v54 = vmul.f32 1.442695, %v226_v30  ;;  %v330_v2 = vadd.f32 %v652_v49, %v322_v62  ;;  %v665_v31 = vmul.f32 -1.442695, %v326_v45 }
  0x37   :  { %712 = vpow2.f32 %v235_v39  ;;  %v331_v35 = vadd.f32 %v653_v28, %v323_v33  ;;  %v666_v3 = vmul.f32 -1.442695, %v327_v27  ;;  %v667_v4 = vmul.f32 -1.442695, %v328_v0 }
  0x38   :  { %v1137_v57 = vpop.eup %704  ;;  %714 = vpow2.f32 %v237_v48  ;;  %v668_v53 = vmul.f32 -1.442695, %v329_v9  ;;  %v669_v14 = vmul.f32 -1.442695, %v330_v2 }
  0x39   :  { %716 = vpow2.f32 %v239_v12  ;;  %v243_v29 = vsel %vm192_vm0, %v1137_v57, 0.0  ;;  %v670_v59 = vmul.f32 -1.442695, %v331_v35 }
  0x3a   :  { %v1141_v32 = vpop.eup %706  ;;  %718 = vpow2.f32 %v241_v54 }
  0x3b   :  { %v1143_v37 = vpop.eup %708  ;;  %v244_v42 = vsel %vm192_vm0, %v1141_v32, 0.0  ;;  %720 = vpow2.f32 %v663_v46 }
  0x3c   :  { %v1147_v60 = vpop.eup %710  ;;  %v245_v6 = vadd.f32 %v244_v42, %v243_v29  ;;  %v246_v11 = vsel %vm192_vm0, %v1143_v37, 0.0  ;;  %722 = vpow2.f32 %v664_v1 }
  0x3d   :  { %v1151_v36 = vpop.eup %712  ;;  %v248_v51 = vsel %vm192_vm0, %v1147_v60, 0.0  ;;  %724 = vpow2.f32 %v665_v31 }
  0x3e   :  { %v1155_v7 = vpop.eup %714  ;;  %v247_v16 = vadd.f32 %v246_v11, %v245_v6  ;;  %v256_v8 = vsel %vm192_vm0, %v1151_v36, 0.0  ;;  %726 = vpow2.f32 %v666_v3 }
  0x3f   :  { %v1159_v18 = vpop.eup %716  ;;  %v257_v61 = vsel %vm192_vm0, %v1155_v7, 0.0  ;;  %728 = vpow2.f32 %v667_v4 }
  0x40   :  { %v1163_v17 = vpop.eup %718  ;;  %v249_v15 = vadd.f32 %v248_v51, %v247_v16  ;;  %v258_v19 = vadd.f32 %v257_v61, %v256_v8  ;;  %v259_v20 = vsel %vm192_vm0, %v1159_v18, 0.0  ;;  %730 = vpow2.f32 %v668_v53 }
  0x41   :  { %v721_v25 = vpop.eup %720  ;;  %v261_v47 = vsel %vm192_vm0, %v1163_v17, 0.0  ;;  %732 = vpow2.f32 %v669_v14 }
  0x42   :  { %v723_v26 = vpop.eup %722  ;;  %v250_v40 = vrot.slane %v249_v15, 4  ;;  %v260_v21 = vadd.f32 %v259_v20, %v258_v19  ;;  %734 = vpow2.f32 %v670_v59  ;;  %v356_v5 = vadd.f32 1.0, %v721_v25 }
  0x43   :  { %v725_v13 = vpop.eup %724  ;;  %v1169_v58 = vadd.f32 1.0, %v723_v26 }
  0x44   :  { %v727_v22 = vpop.eup %726  ;;  %v251_v41 = vadd.f32 %v250_v40, %v249_v15  ;;  %v262_v43 = vadd.f32 %v261_v47, %v260_v21  ;;  %736 = vrcp.f32 %v356_v5  ;;  %v1171_v44 = vadd.f32 1.0, %v725_v13 }
  0x45   :  { %v729_v30 = vpop.eup %728  ;;  %v375_v23 = vand.u32 2147483648, %v356_v5  ;;  %738 = vrcp.f32 %v1169_v58  ;;  %v1174_v48 = vadd.f32 1.0, %v727_v22  ;;  %v373_v12 = vand.u32 2147483647, %v356_v5 }
  0x46   :  { %v731_v62 = vpop.eup %730  ;;  %v252_v24 = vrot.slane %v251_v41, 2  ;;  %v263_v45 = vrot.slane %v262_v43, 4  ;;  %v1176_v27 = vadd.f32 1.0, %v729_v30  ;;  %vm369_vm2 = vweird.f32 %v356_v5 }
  0x47   :  { %v733_v39 = vpop.eup %732  ;;  %v1178_v28 = vadd.f32 1.0, %v731_v62  ;;  %v376_v0 = vor.u32 1.1754944e-38, %v375_v23  ;;  %vm384_vm3 = vweird.f32 %v1169_v58  ;;  %740 = vrcp.f32 %v1171_v44 }
  0x48   :  { %v735_v49 = vpop.eup %734  ;;  %v253_v54 = vadd.f32 %v252_v24, %v251_v41  ;;  %v264_v33 = vadd.f32 %v263_v45, %v262_v43  ;;  %v388_v29 = vand.u32 2147483647, %v1169_v58  ;;  %v390_v2 = vand.u32 2147483648, %v1169_v58 }
  0x49   :  { %v1184_v31 = vadd.f32 1.0, %v733_v39  ;;  %v1186_v35 = vadd.f32 1.0, %v735_v49  ;;  %vm1188_vm4 = vcmp.eq.f32.partialorder %v373_v12, 8.507059e+37  ;;  %v405_v4 = vand.u32 2147483648, %v1171_v44 }
  0x4a   :  { %v737_v46 = vpop.eup %736  ;;  %v254_v9 = vrot.slane %v253_v54, 1  ;;  %v265_v1 = vrot.slane %v264_v33, 2  ;;  %v403_v51 = vand.u32 2147483647, %v1171_v44  ;;  %742 = vrcp.f32 %v1174_v48 }
  0x4b   :  { %v365_v3 = vmul.f32 %v737_v46, %v356_v5  ;;  %v739_v6 = vpop.eup %738  ;;  %vm370_vm5 = vweird.f32 %v737_v46  ;;  %vm399_vm6 = vweird.f32 %v1171_v44  ;;  %vm1200_vm7 = vcmp.eq.f32.partialorder %v388_v29, 8.507059e+37 }
  0x4c   :  { %v1193_v11 = vadd.f32 %v254_v9, %v253_v54  ;;  %v266_v53 = vadd.f32 %v265_v1, %v264_v33  ;;  %v380_v16 = vmul.f32 %v739_v6, %v1169_v58  ;;  %v391_v61 = vor.u32 1.1754944e-38, %v390_v2  ;;  %vm1212_vm9 = vmor %vm369_vm2, %vm370_vm5 }
  0x4d   :  { %v366_v14 = vsub.f32 1.0, %v365_v3  ;;  %v1204_v15 = vpop.eup %740  ;;  %vm385_vm8 = vweird.f32 %v739_v6  ;;  %v406_v25 = vor.u32 1.1754944e-38, %v405_v4  ;;  %vm1218_vm10 = vcmp.eq.f32.partialorder %v403_v51, 8.507059e+37 }
  0x4e   :  { %v267_v8 = vrot.slane %v266_v53, 1  ;;  %744 = vrcp.f32 %v1193_v11  ;;  %v381_v20 = vsub.f32 1.0, %v380_v16  ;;  %v278_v26 = vand.u32 2147483647, %v1193_v11  ;;  %vm1230_vm13 = vmor %vm384_vm3, %vm385_vm8 }
  0x4f   :  { %v367_v19 = vmul.f32 %v737_v46, %v366_v14  ;;  %v280_v40 = vand.u32 2147483648, %v1193_v11  ;;  %v395_v13 = vmul.f32 %v1204_v15, %v1171_v44  ;;  %vm274_vm11 = vweird.f32 %v1193_v11 }
  0x50   :  { %v1206_v47 = vadd.f32 %v267_v8, %v266_v53  ;;  %v382_v43 = vmul.f32 %v739_v6, %v381_v20  ;;  %vm414_vm12 = vweird.f32 %v1174_v48  ;;  %v743_v30 = vpop.eup %742  ;;  %vm400_vm14 = vweird.f32 %v1204_v15 }
  0x51   :  { %v368_v41 = vadd.f32 %v737_v46, %v367_v19  ;;  %v396_v39 = vsub.f32 1.0, %v395_v13  ;;  %v410_v12 = vmul.f32 %v743_v30, %v1174_v48  ;;  %vm1238_vm15 = vcmp.eq.f32.partialorder %v278_v26, 8.507059e+37  ;;  %vm1258_vm2 = vmor %vm399_vm6, %vm400_vm14 }
  0x52   :  { %746 = vrcp.f32 %v1206_v47  ;;  %v293_v5 = vand.u32 2147483647, %v1206_v47  ;;  %v295_v23 = vand.u32 2147483648, %v1206_v47  ;;  %v383_v45 = vadd.f32 %v739_v6, %v382_v43 }
  0x53   :  { %v372_v24 = vsel %vm1212_vm9, %v737_v46, %v368_v41  ;;  %v281_v33 = vor.u32 1.1754944e-38, %v280_v40  ;;  %vm289_vm1 = vweird.f32 %v1206_v47  ;;  %v418_v58 = vand.u32 2147483647, %v1174_v48 }
  0x54   :  { %v745_v49 = vpop.eup %744  ;;  %v1245_v1 = vor.u32 1.1754944e-38, %v295_v23  ;;  %v387_v46 = vsel %vm1230_vm13, %v739_v6, %v383_v45  ;;  %v397_v29 = vmul.f32 %v1204_v15, %v396_v39  ;;  %v1252_v2 = vsel %vm1188_vm4, %v376_v0, %v372_v24 }
  0x55   :  { %v270_v9 = vmul.f32 %v745_v49, %v1193_v11  ;;  %v411_v4 = vsub.f32 1.0, %v410_v12  ;;  %vm415_vm3 = vweird.f32 %v743_v30  ;;  %v420_v53 = vand.u32 2147483648, %v1174_v48 }
  0x56   :  { %vm275_vm5 = vweird.f32 %v745_v49  ;;  %vm1263_vm8 = vcmp.eq.f32.partialorder %v293_v5, 8.507059e+37  ;;  %v398_v0 = vadd.f32 %v1204_v15, %v397_v29  ;;  %748 = vrcp.f32 %v1176_v27  ;;  %vm1285_vm6 = vmor %vm414_vm12, %vm415_vm3 }
  0x57   :  { %v271_v51 = vsub.f32 1.0, %v270_v9  ;;  %v1271_v44 = vsel %vm1200_vm7, %v391_v61, %v387_v46  ;;  %v412_v14 = vmul.f32 %v743_v30, %v411_v4  ;;  %vm1273_vm4 = vcmp.eq.f32.partialorder %v418_v58, 8.507059e+37  ;;  %vm1292_vm7 = vmor %vm274_vm11, %vm275_vm5 }
  0x58   :  { %v747_v42 = vpop.eup %746  ;;  %v433_v8 = vand.u32 2147483647, %v1176_v27  ;;  %v402_v26 = vsel %vm1258_vm2, %v1204_v15, %v398_v0  ;;  %v435_v61 = vand.u32 2147483648, %v1176_v27  ;;  %v421_v13 = vor.u32 1.1754944e-38, %v420_v53 }
  0x59   :  { %v272_v19 = vmul.f32 %v745_v49, %v271_v51  ;;  %v285_v20 = vmul.f32 %v747_v42, %v1206_v47  ;;  %vm290_vm9 = vweird.f32 %v747_v42  ;;  %v413_v21 = vadd.f32 %v743_v30, %v412_v14 }
  0x5a   :  { %vm429_vm13 = vweird.f32 %v1176_v27  ;;  %v1299_v48 = vsel %vm1218_vm10, %v406_v25, %v402_v26  ;;  %750 = vrcp.f32 %v1178_v28  ;;  %vm1304_vm11 = vcmp.eq.f32.partialorder %v433_v8, 8.507059e+37  ;;  %vm1319_vm12 = vmor %vm289_vm1, %vm290_vm9 }
  0x5b   :  { %v273_v15 = vadd.f32 %v745_v49, %v272_v19  ;;  %v286_v41 = vsub.f32 1.0, %v285_v20  ;;  %v417_v11 = vsel %vm1285_vm6, %v743_v30, %v413_v21  ;;  %v448_v5 = vand.u32 2147483647, %v1178_v28 }
  0x5c   :  { %v450_v23 = vand.u32 2147483648, %v1178_v28  ;;  %752 = vrcp.f32 %v1184_v31  ;;  %v749_v62 = vpop.eup %748  ;;  %v436_v24 = vor.u32 1.1754944e-38, %v435_v61  ;;  %vm444_vm10 = vweird.f32 %v1178_v28 }
  0x5d   :  { %v277_v25 = vsel %vm1292_vm7, %v745_v49, %v273_v15  ;;  %v287_v22 = vmul.f32 %v747_v42, %v286_v41  ;;  %v422_v39 = vsel %vm1273_vm4, %v421_v13, %v417_v11  ;;  %v425_v12 = vmul.f32 %v749_v62, %v1176_v27 }
  0x5e   :  { %v282_v30 = vsel %vm1238_vm15, %v281_v33, %v277_v25  ;;  %vm459_vm14 = vweird.f32 %v1184_v31  ;;  %vm430_vm15 = vweird.f32 %v749_v62  ;;  %vm1339_vm1 = vcmp.eq.f32.partialorder %v448_v5, 8.507059e+37 }
  0x5f   :  { %v288_v49 = vadd.f32 %v747_v42, %v287_v22  ;;  %v1328_v58 = vmul.f32 %v1137_v57, %v282_v30  ;;  %v1331_v54 = vmul.f32 %v1141_v32, %v282_v30  ;;  %v1334_v47 = vmul.f32 %v1143_v37, %v282_v30  ;;  %vm1361_vm3 = vmor %vm429_vm13, %vm430_vm15 }
  0x60   :  { %v1337_v33 = vmul.f32 %v1147_v60, %v282_v30  ;;  %v426_v9 = vsub.f32 1.0, %v425_v12  ;;  %v451_v29 = vor.u32 1.1754944e-38, %v450_v23  ;;  %v751_v3 = vpop.eup %750  ;;  %v463_v32 = vand.u32 2147483647, %v1184_v31 }
  0x61   :  { %v292_v57 = vsel %vm1319_vm12, %v747_v42, %v288_v49  ;;  %v465_v4 = vand.u32 2147483648, %v1184_v31  ;;  %754 = vrcp.f32 %v1186_v35  ;;  %v440_v51 = vmul.f32 %v751_v3, %v1178_v28 }
  0x62   :  { %v753_v37 = vpop.eup %752  ;;  %v297_v60 = vsel %vm1263_vm8, %v1245_v1, %v292_v57  ;;  %v427_v53 = vmul.f32 %v749_v62, %v426_v9  ;;  %vm474_vm2 = vweird.f32 %v1186_v35  ;;  %vm445_vm5 = vweird.f32 %v751_v3 }
  0x63   :  { %v303_v0 = vmul.f32 %v1151_v36, %v297_v60  ;;  %v304_v42 = vmul.f32 %v1155_v7, %v297_v60  ;;  %v1356_v14 = vmul.f32 %v1159_v18, %v297_v60  ;;  %v1366_v1 = vmul.f32 %v1163_v17, %v297_v60  ;;  %vm1383_vm6 = vmor %vm444_vm10, %vm445_vm5 }
  0x64   :  { %v428_v6 = vadd.f32 %v749_v62, %v427_v53  ;;  %v441_v8 = vsub.f32 1.0, %v440_v51  ;;  %v455_v36 = vmul.f32 %v753_v37, %v1184_v31  ;;  %vm460_vm8 = vweird.f32 %v753_v37 }
  0x65   :  { %vm1369_vm4 = vcmp.eq.f32.partialorder %v463_v32, 8.507059e+37  ;;  %v478_v18 = vand.u32 2147483647, %v1186_v35  ;;  %v480_v27 = vand.u32 2147483648, %v1186_v35  ;;  %v484_v17 = vmax.f32 %v1252_v2, 1e-06  ;;  %vm1396_vm9 = vmor %vm459_vm14, %vm460_vm8 }
  0x66   :  { %v432_v19 = vsel %vm1361_vm3, %v749_v62, %v428_v6  ;;  %v442_v20 = vmul.f32 %v751_v3, %v441_v8  ;;  %v456_v26 = vsub.f32 1.0, %v455_v36  ;;  %v466_v21 = vor.u32 1.1754944e-38, %v465_v4 }
  0x67   :  { %v755_v59 = vpop.eup %754  ;;  %v437_v61 = vsel %vm1304_vm11, %v436_v24, %v432_v19  ;;  %vm1387_vm7 = vcmp.eq.f32.partialorder %v478_v18, 8.507059e+37  ;;  %v485_v15 = vmax.f32 %v1271_v44, 1e-06  ;;  %v481_v43 = vor.u32 1.1754944e-38, %v480_v27 }
  0x68   :  { %v443_v41 = vadd.f32 %v751_v3, %v442_v20  ;;  %v457_v2 = vmul.f32 %v753_v37, %v456_v26  ;;  %v470_v11 = vmul.f32 %v755_v59, %v1186_v35  ;;  %vm475_vm13 = vweird.f32 %v755_v59 }
  0x69   :  { %v486_v5 = vmax.f32 %v1299_v48, 1e-06  ;;  %v487_v23 = vmax.f32 %v422_v39, 1e-06  ;;  %v488_v62 = vmax.f32 %v437_v61, 1e-06  ;;  %vm1412_vm11 = vmor %vm474_vm2, %vm475_vm13 }
  0x6a   :  { %v447_v44 = vsel %vm1383_vm6, %v751_v3, %v443_v41  ;;  %v458_v25 = vadd.f32 %v753_v37, %v457_v2  ;;  %v471_v22 = vsub.f32 1.0, %v470_v11  ;;  %v492_v24 = vmin.f32 %v484_v17, 0.999999 }
  0x6b   :  { %v452_v30 = vsel %vm1339_vm1, %v451_v29, %v447_v44  ;;  %v493_v45 = vmin.f32 %v485_v15, 0.999999  ;;  %v494_v31 = vmin.f32 %v486_v5, 0.999999  ;;  %v495_v12 = vmin.f32 %v487_v23, 0.999999 }
  0x6c   :  { %v462_v49 = vsel %vm1396_vm9, %v753_v37, %v458_v25  ;;  %v472_v9 = vmul.f32 %v755_v59, %v471_v22  ;;  %v489_v57 = vmax.f32 %v452_v30, 1e-06  ;;  %v496_v48 = vmin.f32 %v488_v62, 0.999999 }
  0x6d   :  { %v467_v39 = vsel %vm1369_vm4, %v466_v21, %v462_v49  ;;  %v500_v46 = vmul.f32 %v492_v24, %v1328_v58  ;;  %v501_v29 = vmul.f32 %v493_v45, %v1331_v54  ;;  %v502_v32 = vmul.f32 %v494_v31, %v1334_v47 }
  0x6e   :  { %v473_v4 = vadd.f32 %v755_v59, %v472_v9  ;;  %v490_v37 = vmax.f32 %v467_v39, 1e-06  ;;  %v497_v60 = vmin.f32 %v489_v57, 0.999999  ;;  %v503_v53 = vmul.f32 %v495_v12, %v1337_v33 }
  0x6f   :  { %v504_v51 = vmul.f32 %v496_v48, %v303_v0  ;;  %v508_v16 = vsel %vm192_vm0, %v500_v46, 0.0  ;;  %v509_v35 = vsel %vm192_vm0, %v501_v29, 0.0  ;;  %v511_v6 = vsel %vm192_vm0, %v502_v32, 0.0 }
  0x70   :  { %v477_v8 = vsel %vm1412_vm11, %v755_v59, %v473_v4  ;;  %v498_v58 = vmin.f32 %v490_v37, 0.999999  ;;  %v505_v36 = vmul.f32 %v497_v60, %v304_v42  ;;  %v510_v54 = vadd.f32 %v509_v35, %v508_v16 }
  0x71   :  { %v482_v47 = vsel %vm1387_vm7, %v481_v43, %v477_v8  ;;  %v513_v7 = vsel %vm192_vm0, %v503_v53, 0.0  ;;  %v521_v33 = vsel %vm192_vm0, %v504_v51, 0.0  ;;  %v534_v0 = vsub.f32 1.0, %v492_v24 }
  0x72   :  { %v491_v18 = vmax.f32 %v482_v47, 1e-06  ;;  %v506_v27 = vmul.f32 %v498_v58, %v1356_v14  ;;  %v512_v19 = vadd.f32 %v511_v6, %v510_v54  ;;  %v522_v20 = vsel %vm192_vm0, %v505_v36, 0.0 }
  0x73   :  { %v523_v26 = vadd.f32 %v522_v20, %v521_v33  ;;  %v535_v17 = vsub.f32 1.0, %v493_v45  ;;  %v536_v59 = vsub.f32 1.0, %v494_v31  ;;  %v537_v61 = vsub.f32 1.0, %v495_v12 }
  0x74   :  { %v499_v42 = vmin.f32 %v491_v18, 0.999999  ;;  %v514_v40 = vadd.f32 %v513_v7, %v512_v19  ;;  %v524_v21 = vsel %vm192_vm0, %v506_v27, 0.0  ;;  %v538_v13 = vsub.f32 1.0, %v496_v48 }
  0x75   :  { %v525_v15 = vadd.f32 %v524_v21, %v523_v26  ;;  %v539_v41 = vsub.f32 1.0, %v497_v60  ;;  %v540_v2 = vsub.f32 1.0, %v498_v58  ;;  %v542_v11 = vmul.f32 %v534_v0, %v500_v46 }
  0x76   :  { %v507_v43 = vmul.f32 %v499_v42, %v1366_v1  ;;  %v515_v28 = vrot.slane %v514_v40, 4  ;;  %v541_v14 = vsub.f32 1.0, %v499_v42  ;;  %v543_v5 = vmul.f32 %v535_v17, %v501_v29 }
  0x77   :  { %v544_v23 = vmul.f32 %v536_v59, %v502_v32  ;;  %v545_v62 = vmul.f32 %v537_v61, %v503_v53  ;;  %v546_v44 = vmul.f32 %v538_v13, %v504_v51  ;;  %v547_v25 = vmul.f32 %v539_v41, %v505_v36 }
  0x78   :  { %v516_v22 = vadd.f32 %v515_v28, %v514_v40  ;;  %v526_v24 = vsel %vm192_vm0, %v507_v43, 0.0  ;;  %v548_v30 = vmul.f32 %v540_v2, %v506_v27  ;;  %v549_v45 = vmul.f32 %v541_v14, %v507_v43 }
  0x79   :  { %v527_v31 = vadd.f32 %v526_v24, %v525_v15  ;;  %v550_v12 = vmul.f32 %v542_v11, %v1065_v34  ;;  %v551_v49 = vmul.f32 %v543_v5, %v1075_v50  ;;  %v552_v9 = vmul.f32 %v544_v23, %v1077_v55 }
  0x7a   :  { %v517_v1 = vrot.slane %v516_v22, 2  ;;  %v553_v57 = vmul.f32 %v545_v62, %v1079_v38  ;;  %v554_v48 = vmul.f32 %v546_v44, %v1089_v10  ;;  %v555_v39 = vmul.f32 %v547_v25, %v1091_v63 }
  0x7b   :  { %v528_v3 = vrot.slane %v527_v31, 4  ;;  %v556_v46 = vmul.f32 %v548_v30, %v1101_v56  ;;  %v557_v29 = vmul.f32 %v549_v45, %v1103_v52  ;;  %v558_v32 = vsel %vm192_vm0, %v550_v12, 0.0 }
  0x7c   :  { %v518_v4 = vadd.f32 %v517_v1, %v516_v22  ;;  %v559_v34 = vsel %vm192_vm0, %v551_v49, 0.0  ;;  %v561_v50 = vsel %vm192_vm0, %v552_v9, 0.0  ;;  %v571_v38 = vsel %vm192_vm0, %v554_v48, 0.0 }
  0x7d   :  { %v529_v55 = vadd.f32 %v528_v3, %v527_v31  ;;  %v560_v37 = vadd.f32 %v559_v34, %v558_v32  ;;  %v572_v10 = vsel %vm192_vm0, %v555_v39, 0.0  ;;  %v563_v63 = vsel %vm192_vm0, %v553_v57, 0.0 }
  0x7e   :  { %v519_v60 = vrot.slane %v518_v4, 1  ;;  %v573_v53 = vadd.f32 %v572_v10, %v571_v38  ;;  %v574_v56 = vsel %vm192_vm0, %v556_v46, 0.0  ;;  %v576_v16 = vsel %vm192_vm0, %v557_v29, 0.0 }
  0x7f   :  { %v530_v52 = vrot.slane %v529_v55, 2  ;;  %v562_v51 = vadd.f32 %v561_v50, %v560_v37  ;;  %vm608_vm0 = vcmask 1041409   ;;  %vm611_vm10 = vcmask 123904  }
  0x80   :  { %v520_v35 = vadd.f32 %v519_v60, %v518_v4  ;;  %v575_v6 = vadd.f32 %v574_v56, %v573_v53  ;;  %vm624_vm12 = vcmask 1024  }
  0x81   :  { %v531_v8 = vadd.f32 %v530_v52, %v529_v55  ;;  %v564_v58 = vadd.f32 %v563_v63, %v562_v51 }
  0x82   :  { %v577_v36 = vadd.f32 %v576_v16, %v575_v6  ;;  %v590_v54 = vmax.f32 %v520_v35, 1e-06 }
  0x83   :  { %v532_v47 = vrot.slane %v531_v8, 1  ;;  %v565_v7 = vrot.slane %v564_v58, 4 }
  0x84   :  { %v578_v33 = vrot.slane %v577_v36, 4  ;;  %v592_v0 = vmin.f32 %v590_v54, 0.999999 }
  0x85   :  { %v533_v18 = vadd.f32 %v532_v47, %v531_v8  ;;  %v566_v27 = vadd.f32 %v565_v7, %v564_v58 }
  0x86   :  { %v579_v19 = vadd.f32 %v578_v33, %v577_v36  ;;  %v598_v20 = vsub.f32 1.0, %v592_v0  ;;  %756 = vlog2.f32 %v592_v0 }
  0x87   :  { %v567_v26 = vrot.slane %v566_v27, 2  ;;  %v591_v17 = vmax.f32 %v533_v18, 1e-06 }
  0x88   :  { %v580_v59 = vrot.slane %v579_v19, 2  ;;  %758 = vlog2.f32 %v598_v20 }
  0x89   :  { %v568_v61 = vadd.f32 %v567_v26, %v566_v27  ;;  %v593_v42 = vmin.f32 %v591_v17, 0.999999 }
  0x8a   :  { %v581_v40 = vadd.f32 %v580_v59, %v579_v19 }
  0x8b   :  { %v569_v21 = vrot.slane %v568_v61, 1  ;;  %760 = vlog2.f32 %v593_v42  ;;  %v599_v13 = vsub.f32 1.0, %v593_v42 }
  0x8c   :  { %v582_v15 = vrot.slane %v581_v40, 1  ;;  %v757_v2 = vpop.eup %756 }
  0x8d   :  { %v570_v41 = vadd.f32 %v569_v21, %v568_v61  ;;  %762 = vlog2.f32 %v599_v13  ;;  %v595_v23 = vmul.f32 0.6931472, %v757_v2 }
  0x8e   :  { %v583_v11 = vadd.f32 %v582_v15, %v581_v40  ;;  %v759_v43 = vpop.eup %758 }
  0x8f   :  { %v584_v28 = vmax.f32 %v570_v41, 1e-06  ;;  %v601_v62 = vmul.f32 0.6931472, %v759_v43 }
  0x90   :  { %v585_v14 = vmax.f32 %v583_v11, 1e-06 }
  0x91   :  { %v761_v5 = vpop.eup %760  ;;  %764 = vlog2.f32 %v584_v28  ;;  %v604_v24 = vsub.f32 %v595_v23, %v601_v62  ;;  %v613_v45 = vadd.f32 %v601_v62, %v595_v23 }
  0x92   :  { %766 = vlog2.f32 %v585_v14  ;;  %v597_v25 = vmul.f32 0.6931472, %v761_v5 }
  0x93   :  { %v763_v44 = vpop.eup %762 }
  0x94   :  { %v603_v22 = vmul.f32 0.6931472, %v763_v44 }
  0x96   :  { %v605_v30 = vsub.f32 %v597_v25, %v603_v22  ;;  %v614_v12 = vadd.f32 %v603_v22, %v597_v25 }
  0x97   :  { %v765_v31 = vpop.eup %764 }
  0x98   :  { %v767_v49 = vpop.eup %766  ;;  %v587_v9 = vmul.f32 0.6931472, %v765_v31  ;;  %v609_v1 = vsel %vm608_vm0, %v605_v30, %v604_v24 }
  0x99   :  { %v589_v57 = vmul.f32 0.6931472, %v767_v49  ;;  %612 = vst.msk [vmem:[#allocation2] sm:$0x3] %vm611_vm10, %v609_v1 }
  0x9a   :  { %v615_v48 = vsub.f32 %v587_v9, %v613_v45  ;;  %636 = dma.vmem_to_hbm [thread:$0]  %s632_s7, 32, %s634_s10, [#allocation3]  }
  0x9b   :  { %v616_v39 = vsub.f32 %v589_v57, %v614_v12 }
  0x9d   :  { %v619_v3 = vsel %vm608_vm0, %v616_v39, %v615_v48 }
  0x9e   :  { %v621_v46 = vsel %vm611_vm10, %v619_v3, 0.0 }
  0x9f   :  { %622 = vadd.xlane.f32.xlu0 %v621_v46 }
 0x112   :  { %v623_v29 = vpop.xlane.xlu0 %622 }
 0x113   :  { %625 = vst.msk [vmem:[%s1459_s3] sm:$0x3] %vm624_vm12, %v623_v29 }
 0x114   :  { %792 = dma.done.wait [#allocation3], 32  }
 0x115   :  { %793 = vsyncadd [#allocation3], 4294967264 }
 0x116   :  { %645 = vsyncpa [#allocation3], 1 }

</bundles_post_ra>
